<compile_context>
chip_gen: v7x
topology: tpu7x:2x2x1
jax: 0.10.0
libtpu: 0.0.40
codegen_flags: <defaults>
</compile_context>

<pallas_src>
import functools

import jax
import jax.numpy as jnp
from jax.experimental import pallas as pl
from jax.experimental.pallas import tpu as pltpu

IN_DIM = 28 * 28   # 784
LATENT = 16
HEAD_OUT = 128     # lane-dense padded width of the fused mu||log_var head

# flops per sample: 2 * sum(K*N) over all matmuls (head padded to 32x128)
_FLOPS_PER_SAMPLE = 2 * (784 * 128 + 128 * 64 + 64 * 32 + 32 * HEAD_OUT
                         + 16 * 32 + 32 * 64 + 64 * 128 + 128 * 784)
# transcendentals per sample: exp for std (16) + tanh-sigmoid (784)
_TRANS_PER_SAMPLE = LATENT + IN_DIM


def _round_up(x, m):
    return ((x + m - 1) // m) * m


def _vae_kernel(
    x_ref, eps_ref,
    # encoder: 784->128->64->32
    ew1, eb1, ew2, eb2, ew3, eb3,
    # fused latent heads, padded: 32 -> 128  (mu || log_var || zeros)
    whd, bhd,
    # decoder: 16->32->64->128->784
    dw1, db1, dw2, db2, dw3, db3, dw4, db4,
    # outputs
    recon_ref, mulv_ref,
):
    x = x_ref[...]

    def dense(h, w_ref, b_ref):
        # MXU in bf16 (weights already bf16, activations cast here); f32
        # accumulate; bias add (f32, broadcasts over batch/sublanes) on VPU.
        return jnp.dot(h.astype(jnp.bfloat16), w_ref[...],
                       preferred_element_type=jnp.float32) + b_ref[...]

    # ---- encoder ----
    h = jax.nn.relu(dense(x, ew1, eb1))
    h = jax.nn.relu(dense(h, ew2, eb2))
    h = dense(h, ew3, eb3)

    # ---- fused latent heads: one (TB,32) x (32,128) matmul, lane-dense ----
    mulv = dense(h, whd, bhd)            # [:, :16]=mu, [:, 16:32]=log_var, rest 0
    mu = mulv[:, :LATENT]
    log_var = mulv[:, LATENT:2 * LATENT]

    # ---- reparametrize: z = mu + eps * exp(0.5 * log_var)  (f32) ----
    std = jnp.exp(0.5 * log_var)
    z = mu + eps_ref[...] * std

    # ---- decoder ----
    d = jax.nn.relu(dense(z, dw1, db1))
    d = jax.nn.relu(dense(d, dw2, db2))
    d = jax.nn.relu(dense(d, dw3, db3))
    logits = dense(d, dw4, db4)
    # sigmoid(v) == 0.5 * (tanh(0.5 * v) + 1): EUP tanh + one VPU FMA.
    recon_ref[...] = 0.5 * (jnp.tanh(0.5 * logits) + 1.0)
    mulv_ref[...] = mulv


def init_params(key):
    """PyTorch-style uniform(-1/sqrt(fan_in), 1/sqrt(fan_in)) init.

    Weights are stored as (in_features, out_features); biases as (1, out)."""
    dims = [
        (784, 128), (128, 64), (64, 32),            # encoder
        (32, 16), (32, 16),                         # fc_mu, fc_log_var
        (16, 32), (32, 64), (64, 128), (128, 784),  # decoder
    ]
    params = []
    for (fan_in, fan_out) in dims:
        key, kw, kb = jax.random.split(key, 3)
        bound = 1.0 / jnp.sqrt(jnp.float32(fan_in))
        w = jax.random.uniform(kw, (fan_in, fan_out), jnp.float32, -bound, bound)
        b = jax.random.uniform(kb, (1, fan_out), jnp.float32, -bound, bound)
        params.append(w)
        params.append(b)
    return params


@functools.partial(jax.jit, static_argnames=("tb",))
def vae_forward(x, eps, params, *, tb=512):
    (ew1, eb1, ew2, eb2, ew3, eb3,
     wmu, bmu, wlv, blv,
     dw1, db1, dw2, db2, dw3, db3, dw4, db4) = params

    # Fuse the mu / log_var heads and pad to 128 output lanes (zero columns)
    # so the mulv output block is lane-dense.
    whd = jnp.pad(jnp.concatenate([wmu, wlv], axis=1),
                  ((0, 0), (0, HEAD_OUT - 2 * LATENT)))      # (32, 128)
    bhd = jnp.pad(jnp.concatenate([bmu, blv], axis=1),
                  ((0, 0), (0, HEAD_OUT - 2 * LATENT)))      # (1, 128)

    bf16 = lambda w: w.astype(jnp.bfloat16)
    kernel_params = (bf16(ew1), eb1, bf16(ew2), eb2, bf16(ew3), eb3,
                     bf16(whd), bhd,
                     bf16(dw1), db1, bf16(dw2), db2,
                     bf16(dw3), db3, bf16(dw4), db4)

    B = x.shape[0]
    # Balanced batch tiles: minimize padding (B=300 -> 2 x 152, not 512) and
    # keep >= 2 tiles whenever possible so v7x's two TensorCores both get work.
    num_tiles = pl.cdiv(B, tb)
    if num_tiles == 1 and B > 8:
        num_tiles = 2
    TB = _round_up(pl.cdiv(B, num_tiles), 8)   # sublane-aligned batch tile
    grid_n = pl.cdiv(B, TB)
    Bp = grid_n * TB
    if Bp != B:
        pad = Bp - B
        x = jnp.pad(x, ((0, pad), (0, 0)))
        eps = jnp.pad(eps, ((0, pad), (0, 0)))

    # Batch-tiled specs for activations; constant-block specs pin the weights
    # resident in VMEM across all grid steps.
    batched = lambda feat: pl.BlockSpec((TB, feat), lambda i: (i, 0))
    resident = lambda p: pl.BlockSpec(p.shape, lambda i: (0, 0))
    in_specs = ([batched(IN_DIM), batched(LATENT)]
                + [resident(p) for p in kernel_params])
    out_specs = (batched(IN_DIM), batched(HEAD_OUT))
    out_shapes = (
        jax.ShapeDtypeStruct((Bp, IN_DIM), jnp.float32),     # reconstruction
        jax.ShapeDtypeStruct((Bp, HEAD_OUT), jnp.float32),   # mu||log_var||0
    )

    param_bytes = sum(p.size * p.dtype.itemsize for p in kernel_params)
    act_bytes = 4 * (Bp * IN_DIM * 2 + Bp * LATENT + Bp * HEAD_OUT)
    cost = pl.CostEstimate(
        flops=Bp * _FLOPS_PER_SAMPLE,
        transcendentals=Bp * _TRANS_PER_SAMPLE,
        bytes_accessed=int(param_bytes + act_bytes),
    )

    recon, mulv = pl.pallas_call(
        _vae_kernel,
        out_shape=out_shapes,
        grid=(grid_n,),
        in_specs=in_specs,
        out_specs=out_specs,
        compiler_params=pltpu.CompilerParams(
            dimension_semantics=("parallel",)),
        cost_estimate=cost,
    )(x, eps, *kernel_params)

    recon = recon[:B]
    mu = mulv[:B, :LATENT]
    log_var = mulv[:B, LATENT:2 * LATENT]
    return recon, mu, log_var


def vae_forward_ref(x, eps, params):
    """Pure-JAX full-f32 reference of the same forward pass (PyTorch math)."""
    (ew1, eb1, ew2, eb2, ew3, eb3,
     wmu, bmu, wlv, blv,
     dw1, db1, dw2, db2, dw3, db3, dw4, db4) = params
    h = jax.nn.relu(x @ ew1 + eb1)
    h = jax.nn.relu(h @ ew2 + eb2)
    h = h @ ew3 + eb3
    mu = h @ wmu + bmu
    log_var = h @ wlv + blv
    z = mu + eps * jnp.exp(0.5 * log_var)
    d = jax.nn.relu(z @ dw1 + db1)
    d = jax.nn.relu(d @ dw2 + db2)
    d = jax.nn.relu(d @ dw3 + db3)
    recon = jax.nn.sigmoid(d @ dw4 + db4)
    return recon, mu, log_var


def _check(x, eps, params):
    recon, mu, log_var = vae_forward(x, eps, params)
    jax.block_until_ready((recon, mu, log_var))
    recon_r, mu_r, lv_r = vae_forward_ref(x, eps, params)
    B = x.shape[0]
    assert recon.shape == (B, IN_DIM) and mu.shape == (B, LATENT)
    assert log_var.shape == (B, LATENT)
    # bf16 MXU operands => compare against the f32 reference at loose tol.
    assert jnp.allclose(recon, recon_r, atol=3e-2, rtol=3e-2)
    assert jnp.allclose(mu, mu_r, atol=3e-2, rtol=3e-2)
    assert jnp.allclose(log_var, lv_r, atol=3e-2, rtol=3e-2)


if __name__ == "__main__":
    key = jax.random.PRNGKey(0)
    k_params, k_x, k_eps, k_x2, k_eps2 = jax.random.split(key, 5)

    params = init_params(k_params)

    # Small demo batch (single grid step, TB = 8).
    B = 8
    x = jax.random.uniform(k_x, (B, IN_DIM), jnp.float32)     # flattened images
    eps = jax.random.normal(k_eps, (B, LATENT), jnp.float32)  # reparam noise
    _check(x, eps, params)

    # Larger, non-multiple batch: exercises balanced tiles (2 x 152) + padding.
    B2 = 300
    x2 = jax.random.uniform(k_x2, (B2, IN_DIM), jnp.float32)
    eps2 = jax.random.normal(k_eps2, (B2, LATENT), jnp.float32)
    _check(x2, eps2, params)

    print("KERNEL_OK")
</pallas_src>

<mosaic_0001>
module attributes {stable_mosaic.version = 11 : i64} {
  func.func @_vae_kernel(%arg0: i32, %arg1: memref<8x784xf32, #tpu.memory_space<vmem>>, %arg2: memref<8x16xf32, #tpu.memory_space<vmem>>, %arg3: memref<784x128xbf16, #tpu.memory_space<vmem>>, %arg4: memref<1x128xf32, #tpu.memory_space<vmem>>, %arg5: memref<128x64xbf16, #tpu.memory_space<vmem>>, %arg6: memref<1x64xf32, #tpu.memory_space<vmem>>, %arg7: memref<64x32xbf16, #tpu.memory_space<vmem>>, %arg8: memref<1x32xf32, #tpu.memory_space<vmem>>, %arg9: memref<32x128xbf16, #tpu.memory_space<vmem>>, %arg10: memref<1x128xf32, #tpu.memory_space<vmem>>, %arg11: memref<16x32xbf16, #tpu.memory_space<vmem>>, %arg12: memref<1x32xf32, #tpu.memory_space<vmem>>, %arg13: memref<32x64xbf16, #tpu.memory_space<vmem>>, %arg14: memref<1x64xf32, #tpu.memory_space<vmem>>, %arg15: memref<64x128xbf16, #tpu.memory_space<vmem>>, %arg16: memref<1x128xf32, #tpu.memory_space<vmem>>, %arg17: memref<128x784xbf16, #tpu.memory_space<vmem>>, %arg18: memref<1x784xf32, #tpu.memory_space<vmem>>, %arg19: memref<8x784xf32, #tpu.memory_space<vmem>>, %arg20: memref<8x128xf32, #tpu.memory_space<vmem>>) attributes {dimension_semantics = [#tpu.dimension_semantics<parallel>], iteration_bounds = array<i64: 1>, scalar_prefetch = 0 : i64, scratch_operands = 0 : i64, tpu.core_type = #tpu.core_type<tc>, window_params = [{transform_indices = @transform_0, window_bounds = array<i64: 8, 784>}, {transform_indices = @transform_1, window_bounds = array<i64: 8, 16>}, {pipeline_mode = #tpu.pipeline_mode<synchronous>, transform_indices = @transform_2, window_bounds = array<i64: 784, 128>}, {pipeline_mode = #tpu.pipeline_mode<synchronous>, transform_indices = @transform_3, window_bounds = array<i64: 1, 128>}, {pipeline_mode = #tpu.pipeline_mode<synchronous>, transform_indices = @transform_4, window_bounds = array<i64: 128, 64>}, {pipeline_mode = #tpu.pipeline_mode<synchronous>, transform_indices = @transform_5, window_bounds = array<i64: 1, 64>}, {pipeline_mode = #tpu.pipeline_mode<synchronous>, transform_indices = @transform_6, window_bounds = array<i64: 64, 32>}, {pipeline_mode = #tpu.pipeline_mode<synchronous>, transform_indices = @transform_7, window_bounds = array<i64: 1, 32>}, {pipeline_mode = #tpu.pipeline_mode<synchronous>, transform_indices = @transform_8, window_bounds = array<i64: 32, 128>}, {pipeline_mode = #tpu.pipeline_mode<synchronous>, transform_indices = @transform_9, window_bounds = array<i64: 1, 128>}, {pipeline_mode = #tpu.pipeline_mode<synchronous>, transform_indices = @transform_10, window_bounds = array<i64: 16, 32>}, {pipeline_mode = #tpu.pipeline_mode<synchronous>, transform_indices = @transform_11, window_bounds = array<i64: 1, 32>}, {pipeline_mode = #tpu.pipeline_mode<synchronous>, transform_indices = @transform_12, window_bounds = array<i64: 32, 64>}, {pipeline_mode = #tpu.pipeline_mode<synchronous>, transform_indices = @transform_13, window_bounds = array<i64: 1, 64>}, {pipeline_mode = #tpu.pipeline_mode<synchronous>, transform_indices = @transform_14, window_bounds = array<i64: 64, 128>}, {pipeline_mode = #tpu.pipeline_mode<synchronous>, transform_indices = @transform_15, window_bounds = array<i64: 1, 128>}, {pipeline_mode = #tpu.pipeline_mode<synchronous>, transform_indices = @transform_16, window_bounds = array<i64: 128, 784>}, {pipeline_mode = #tpu.pipeline_mode<synchronous>, transform_indices = @transform_17, window_bounds = array<i64: 1, 784>}, {transform_indices = @transform_18, window_bounds = array<i64: 8, 784>}, {transform_indices = @transform_19, window_bounds = array<i64: 8, 128>}]} {
    %c0 = arith.constant 0 : index
    %c0_0 = arith.constant 0 : index
    %0 = vector.load %arg1[%c0, %c0_0] : memref<8x784xf32, #tpu.memory_space<vmem>>, vector<8x784xf32>
    %1 = arith.truncf %0 : vector<8x784xf32> to vector<8x784xbf16>
    %c0_1 = arith.constant 0 : index
    %c0_2 = arith.constant 0 : index
    %2 = vector.load %arg3[%c0_1, %c0_2] : memref<784x128xbf16, #tpu.memory_space<vmem>>, vector<784x128xbf16>
    %cst = arith.constant dense<0.000000e+00> : vector<8x128xf32>
    %3 = tpu.matmul %1, %2, %cst {dimension_numbers = #tpu.dot_dimension_numbers<[1], [0], [0], [1], [0, 0, 1, 1], [], []>} : vector<8x784xbf16>, vector<784x128xbf16>, vector<8x128xf32> -> vector<8x128xf32>
    %c0_3 = arith.constant 0 : index
    %c0_4 = arith.constant 0 : index
    %4 = vector.load %arg4[%c0_3, %c0_4] : memref<1x128xf32, #tpu.memory_space<vmem>>, vector<1x128xf32>
    %5 = vector.broadcast %4 : vector<1x128xf32> to vector<8x128xf32>
    %6 = arith.addf %3, %5 : vector<8x128xf32>
    %cst_5 = arith.constant 0.000000e+00 : f32
    %7 = vector.broadcast %cst_5 : f32 to vector<8x128xf32>
    %8 = arith.maximumf %6, %7 : vector<8x128xf32>
    %9 = arith.truncf %8 : vector<8x128xf32> to vector<8x128xbf16>
    %c0_6 = arith.constant 0 : index
    %c0_7 = arith.constant 0 : index
    %10 = vector.load %arg5[%c0_6, %c0_7] : memref<128x64xbf16, #tpu.memory_space<vmem>>, vector<128x64xbf16>
    %cst_8 = arith.constant dense<0.000000e+00> : vector<8x64xf32>
    %11 = tpu.matmul %9, %10, %cst_8 {dimension_numbers = #tpu.dot_dimension_numbers<[1], [0], [0], [1], [0, 0, 1, 1], [], []>} : vector<8x128xbf16>, vector<128x64xbf16>, vector<8x64xf32> -> vector<8x64xf32>
    %c0_9 = arith.constant 0 : index
    %c0_10 = arith.constant 0 : index
    %12 = vector.load %arg6[%c0_9, %c0_10] : memref<1x64xf32, #tpu.memory_space<vmem>>, vector<1x64xf32>
    %13 = vector.broadcast %12 : vector<1x64xf32> to vector<8x64xf32>
    %14 = arith.addf %11, %13 : vector<8x64xf32>
    %cst_11 = arith.constant 0.000000e+00 : f32
    %15 = vector.broadcast %cst_11 : f32 to vector<8x64xf32>
    %16 = arith.maximumf %14, %15 : vector<8x64xf32>
    %17 = arith.truncf %16 : vector<8x64xf32> to vector<8x64xbf16>
    %c0_12 = arith.constant 0 : index
    %c0_13 = arith.constant 0 : index
    %18 = vector.load %arg7[%c0_12, %c0_13] : memref<64x32xbf16, #tpu.memory_space<vmem>>, vector<64x32xbf16>
    %cst_14 = arith.constant dense<0.000000e+00> : vector<8x32xf32>
    %19 = tpu.matmul %17, %18, %cst_14 {dimension_numbers = #tpu.dot_dimension_numbers<[1], [0], [0], [1], [0, 0, 1, 1], [], []>} : vector<8x64xbf16>, vector<64x32xbf16>, vector<8x32xf32> -> vector<8x32xf32>
    %c0_15 = arith.constant 0 : index
    %c0_16 = arith.constant 0 : index
    %20 = vector.load %arg8[%c0_15, %c0_16] : memref<1x32xf32, #tpu.memory_space<vmem>>, vector<1x32xf32>
    %21 = vector.broadcast %20 : vector<1x32xf32> to vector<8x32xf32>
    %22 = arith.addf %19, %21 : vector<8x32xf32>
    %23 = arith.truncf %22 : vector<8x32xf32> to vector<8x32xbf16>
    %c0_17 = arith.constant 0 : index
    %c0_18 = arith.constant 0 : index
    %24 = vector.load %arg9[%c0_17, %c0_18] : memref<32x128xbf16, #tpu.memory_space<vmem>>, vector<32x128xbf16>
    %cst_19 = arith.constant dense<0.000000e+00> : vector<8x128xf32>
    %25 = tpu.matmul %23, %24, %cst_19 {dimension_numbers = #tpu.dot_dimension_numbers<[1], [0], [0], [1], [0, 0, 1, 1], [], []>} : vector<8x32xbf16>, vector<32x128xbf16>, vector<8x128xf32> -> vector<8x128xf32>
    %c0_20 = arith.constant 0 : index
    %c0_21 = arith.constant 0 : index
    %26 = vector.load %arg10[%c0_20, %c0_21] : memref<1x128xf32, #tpu.memory_space<vmem>>, vector<1x128xf32>
    %27 = vector.broadcast %26 : vector<1x128xf32> to vector<8x128xf32>
    %28 = arith.addf %25, %27 : vector<8x128xf32>
    %29 = vector.extract_strided_slice %28 {offsets = [0, 0], sizes = [8, 16], strides = [1, 1]} : vector<8x128xf32> to vector<8x16xf32>
    %30 = vector.extract_strided_slice %28 {offsets = [0, 16], sizes = [8, 16], strides = [1, 1]} : vector<8x128xf32> to vector<8x16xf32>
    %cst_22 = arith.constant 5.000000e-01 : f32
    %31 = vector.broadcast %cst_22 : f32 to vector<8x16xf32>
    %32 = arith.mulf %31, %30 : vector<8x16xf32>
    %33 = math.exp %32 : vector<8x16xf32>
    %c0_23 = arith.constant 0 : index
    %c0_24 = arith.constant 0 : index
    %34 = vector.load %arg2[%c0_23, %c0_24] : memref<8x16xf32, #tpu.memory_space<vmem>>, vector<8x16xf32>
    %35 = arith.mulf %34, %33 : vector<8x16xf32>
    %36 = arith.addf %29, %35 : vector<8x16xf32>
    %37 = arith.truncf %36 : vector<8x16xf32> to vector<8x16xbf16>
    %c0_25 = arith.constant 0 : index
    %c0_26 = arith.constant 0 : index
    %38 = vector.load %arg11[%c0_25, %c0_26] : memref<16x32xbf16, #tpu.memory_space<vmem>>, vector<16x32xbf16>
    %cst_27 = arith.constant dense<0.000000e+00> : vector<8x32xf32>
    %39 = tpu.matmul %37, %38, %cst_27 {dimension_numbers = #tpu.dot_dimension_numbers<[1], [0], [0], [1], [0, 0, 1, 1], [], []>} : vector<8x16xbf16>, vector<16x32xbf16>, vector<8x32xf32> -> vector<8x32xf32>
    %c0_28 = arith.constant 0 : index
    %c0_29 = arith.constant 0 : index
    %40 = vector.load %arg12[%c0_28, %c0_29] : memref<1x32xf32, #tpu.memory_space<vmem>>, vector<1x32xf32>
    %41 = vector.broadcast %40 : vector<1x32xf32> to vector<8x32xf32>
    %42 = arith.addf %39, %41 : vector<8x32xf32>
    %cst_30 = arith.constant 0.000000e+00 : f32
    %43 = vector.broadcast %cst_30 : f32 to vector<8x32xf32>
    %44 = arith.maximumf %42, %43 : vector<8x32xf32>
    %45 = arith.truncf %44 : vector<8x32xf32> to vector<8x32xbf16>
    %c0_31 = arith.constant 0 : index
    %c0_32 = arith.constant 0 : index
    %46 = vector.load %arg13[%c0_31, %c0_32] : memref<32x64xbf16, #tpu.memory_space<vmem>>, vector<32x64xbf16>
    %cst_33 = arith.constant dense<0.000000e+00> : vector<8x64xf32>
    %47 = tpu.matmul %45, %46, %cst_33 {dimension_numbers = #tpu.dot_dimension_numbers<[1], [0], [0], [1], [0, 0, 1, 1], [], []>} : vector<8x32xbf16>, vector<32x64xbf16>, vector<8x64xf32> -> vector<8x64xf32>
    %c0_34 = arith.constant 0 : index
    %c0_35 = arith.constant 0 : index
    %48 = vector.load %arg14[%c0_34, %c0_35] : memref<1x64xf32, #tpu.memory_space<vmem>>, vector<1x64xf32>
    %49 = vector.broadcast %48 : vector<1x64xf32> to vector<8x64xf32>
    %50 = arith.addf %47, %49 : vector<8x64xf32>
    %cst_36 = arith.constant 0.000000e+00 : f32
    %51 = vector.broadcast %cst_36 : f32 to vector<8x64xf32>
    %52 = arith.maximumf %50, %51 : vector<8x64xf32>
    %53 = arith.truncf %52 : vector<8x64xf32> to vector<8x64xbf16>
    %c0_37 = arith.constant 0 : index
    %c0_38 = arith.constant 0 : index
    %54 = vector.load %arg15[%c0_37, %c0_38] : memref<64x128xbf16, #tpu.memory_space<vmem>>, vector<64x128xbf16>
    %cst_39 = arith.constant dense<0.000000e+00> : vector<8x128xf32>
    %55 = tpu.matmul %53, %54, %cst_39 {dimension_numbers = #tpu.dot_dimension_numbers<[1], [0], [0], [1], [0, 0, 1, 1], [], []>} : vector<8x64xbf16>, vector<64x128xbf16>, vector<8x128xf32> -> vector<8x128xf32>
    %c0_40 = arith.constant 0 : index
    %c0_41 = arith.constant 0 : index
    %56 = vector.load %arg16[%c0_40, %c0_41] : memref<1x128xf32, #tpu.memory_space<vmem>>, vector<1x128xf32>
    %57 = vector.broadcast %56 : vector<1x128xf32> to vector<8x128xf32>
    %58 = arith.addf %55, %57 : vector<8x128xf32>
    %cst_42 = arith.constant 0.000000e+00 : f32
    %59 = vector.broadcast %cst_42 : f32 to vector<8x128xf32>
    %60 = arith.maximumf %58, %59 : vector<8x128xf32>
    %61 = arith.truncf %60 : vector<8x128xf32> to vector<8x128xbf16>
    %c0_43 = arith.constant 0 : index
    %c0_44 = arith.constant 0 : index
    %62 = vector.load %arg17[%c0_43, %c0_44] : memref<128x784xbf16, #tpu.memory_space<vmem>>, vector<128x784xbf16>
    %cst_45 = arith.constant dense<0.000000e+00> : vector<8x784xf32>
    %63 = tpu.matmul %61, %62, %cst_45 {dimension_numbers = #tpu.dot_dimension_numbers<[1], [0], [0], [1], [0, 0, 1, 1], [], []>} : vector<8x128xbf16>, vector<128x784xbf16>, vector<8x784xf32> -> vector<8x784xf32>
    %c0_46 = arith.constant 0 : index
    %c0_47 = arith.constant 0 : index
    %64 = vector.load %arg18[%c0_46, %c0_47] : memref<1x784xf32, #tpu.memory_space<vmem>>, vector<1x784xf32>
    %65 = vector.broadcast %64 : vector<1x784xf32> to vector<8x784xf32>
    %66 = arith.addf %63, %65 : vector<8x784xf32>
    %cst_48 = arith.constant 5.000000e-01 : f32
    %67 = vector.broadcast %cst_48 : f32 to vector<8x784xf32>
    %68 = arith.mulf %67, %66 : vector<8x784xf32>
    %69 = math.tanh %68 : vector<8x784xf32>
    %cst_49 = arith.constant 1.000000e+00 : f32
    %70 = vector.broadcast %cst_49 : f32 to vector<8x784xf32>
    %71 = arith.addf %69, %70 : vector<8x784xf32>
    %cst_50 = arith.constant 5.000000e-01 : f32
    %72 = vector.broadcast %cst_50 : f32 to vector<8x784xf32>
    %73 = arith.mulf %72, %71 : vector<8x784xf32>
    %c0_51 = arith.constant 0 : index
    %c0_52 = arith.constant 0 : index
    %74 = vector.load %arg19[%c0_51, %c0_52] : memref<8x784xf32, #tpu.memory_space<vmem>>, vector<8x784xf32>
    tpu.vector_store %arg19[%c0_51, %c0_52], %73 {strides = array<i32>} : memref<8x784xf32, #tpu.memory_space<vmem>>, vector<8x784xf32>,
    %c0_53 = arith.constant 0 : index
    %c0_54 = arith.constant 0 : index
    %75 = vector.load %arg20[%c0_53, %c0_54] : memref<8x128xf32, #tpu.memory_space<vmem>>, vector<8x128xf32>
    tpu.vector_store %arg20[%c0_53, %c0_54], %28 {strides = array<i32>} : memref<8x128xf32, #tpu.memory_space<vmem>>, vector<8x128xf32>,
    return
  }
  func.func @transform_0(%arg0: i32) -> (i32, i32) {
    %c0_i32 = arith.constant 0 : i32
    %c0_i32_0 = arith.constant 0 : i32
    return %arg0, %c0_i32 : i32, i32
  }
  func.func @transform_1(%arg0: i32) -> (i32, i32) {
    %c0_i32 = arith.constant 0 : i32
    %c0_i32_0 = arith.constant 0 : i32
    return %arg0, %c0_i32 : i32, i32
  }
  func.func @transform_2(%arg0: i32) -> (i32, i32) {
    %c0_i32 = arith.constant 0 : i32
    %c0_i32_0 = arith.constant 0 : i32
    %c0_i32_1 = arith.constant 0 : i32
    return %c0_i32, %c0_i32_0 : i32, i32
  }
  func.func @transform_3(%arg0: i32) -> (i32, i32) {
    %c0_i32 = arith.constant 0 : i32
    %c0_i32_0 = arith.constant 0 : i32
    %c0_i32_1 = arith.constant 0 : i32
    return %c0_i32, %c0_i32_0 : i32, i32
  }
  func.func @transform_4(%arg0: i32) -> (i32, i32) {
    %c0_i32 = arith.constant 0 : i32
    %c0_i32_0 = arith.constant 0 : i32
    %c0_i32_1 = arith.constant 0 : i32
    return %c0_i32, %c0_i32_0 : i32, i32
  }
  func.func @transform_5(%arg0: i32) -> (i32, i32) {
    %c0_i32 = arith.constant 0 : i32
    %c0_i32_0 = arith.constant 0 : i32
    %c0_i32_1 = arith.constant 0 : i32
    return %c0_i32, %c0_i32_0 : i32, i32
  }
  func.func @transform_6(%arg0: i32) -> (i32, i32) {
    %c0_i32 = arith.constant 0 : i32
    %c0_i32_0 = arith.constant 0 : i32
    %c0_i32_1 = arith.constant 0 : i32
    return %c0_i32, %c0_i32_0 : i32, i32
  }
  func.func @transform_7(%arg0: i32) -> (i32, i32) {
    %c0_i32 = arith.constant 0 : i32
    %c0_i32_0 = arith.constant 0 : i32
    %c0_i32_1 = arith.constant 0 : i32
    return %c0_i32, %c0_i32_0 : i32, i32
  }
  func.func @transform_8(%arg0: i32) -> (i32, i32) {
    %c0_i32 = arith.constant 0 : i32
    %c0_i32_0 = arith.constant 0 : i32
    %c0_i32_1 = arith.constant 0 : i32
    return %c0_i32, %c0_i32_0 : i32, i32
  }
  func.func @transform_9(%arg0: i32) -> (i32, i32) {
    %c0_i32 = arith.constant 0 : i32
    %c0_i32_0 = arith.constant 0 : i32
    %c0_i32_1 = arith.constant 0 : i32
    return %c0_i32, %c0_i32_0 : i32, i32
  }
  func.func @transform_10(%arg0: i32) -> (i32, i32) {
    %c0_i32 = arith.constant 0 : i32
    %c0_i32_0 = arith.constant 0 : i32
    %c0_i32_1 = arith.constant 0 : i32
    return %c0_i32, %c0_i32_0 : i32, i32
  }
  func.func @transform_11(%arg0: i32) -> (i32, i32) {
    %c0_i32 = arith.constant 0 : i32
    %c0_i32_0 = arith.constant 0 : i32
    %c0_i32_1 = arith.constant 0 : i32
    return %c0_i32, %c0_i32_0 : i32, i32
  }
  func.func @transform_12(%arg0: i32) -> (i32, i32) {
    %c0_i32 = arith.constant 0 : i32
    %c0_i32_0 = arith.constant 0 : i32
    %c0_i32_1 = arith.constant 0 : i32
    return %c0_i32, %c0_i32_0 : i32, i32
  }
  func.func @transform_13(%arg0: i32) -> (i32, i32) {
    %c0_i32 = arith.constant 0 : i32
    %c0_i32_0 = arith.constant 0 : i32
    %c0_i32_1 = arith.constant 0 : i32
    return %c0_i32, %c0_i32_0 : i32, i32
  }
  func.func @transform_14(%arg0: i32) -> (i32, i32) {
    %c0_i32 = arith.constant 0 : i32
    %c0_i32_0 = arith.constant 0 : i32
    %c0_i32_1 = arith.constant 0 : i32
    return %c0_i32, %c0_i32_0 : i32, i32
  }
  func.func @transform_15(%arg0: i32) -> (i32, i32) {
    %c0_i32 = arith.constant 0 : i32
    %c0_i32_0 = arith.constant 0 : i32
    %c0_i32_1 = arith.constant 0 : i32
    return %c0_i32, %c0_i32_0 : i32, i32
  }
  func.func @transform_16(%arg0: i32) -> (i32, i32) {
    %c0_i32 = arith.constant 0 : i32
    %c0_i32_0 = arith.constant 0 : i32
    %c0_i32_1 = arith.constant 0 : i32
    return %c0_i32, %c0_i32_0 : i32, i32
  }
  func.func @transform_17(%arg0: i32) -> (i32, i32) {
    %c0_i32 = arith.constant 0 : i32
    %c0_i32_0 = arith.constant 0 : i32
    %c0_i32_1 = arith.constant 0 : i32
    return %c0_i32, %c0_i32_0 : i32, i32
  }
  func.func @transform_18(%arg0: i32) -> (i32, i32) {
    %c0_i32 = arith.constant 0 : i32
    %c0_i32_0 = arith.constant 0 : i32
    return %arg0, %c0_i32 : i32, i32
  }
  func.func @transform_19(%arg0: i32) -> (i32, i32) {
    %c0_i32 = arith.constant 0 : i32
    %c0_i32_0 = arith.constant 0 : i32
    return %arg0, %c0_i32 : i32, i32
  }
}

</mosaic_0001>

<bundles_post_ra>
// kernel: vae_forward.1
= control target key start
LH: loop header
LB: loop body
LE: loop exit
PB: predicated region body
PF: predicated region fallthrough
CT: control target
= control target key end

     0   :  { %s2864_s0 = inlined_call_operand.vmem [shape: f32[8,784], index: 0, kind: input, shape index: {}]   ;;  %s2865_s1 = inlined_call_operand.vmem [shape: f32[8,16], index: 1, kind: input, shape index: {}]   ;;  %s2866_s2 = inlined_call_operand.vmem [shape: bf16[784,128], index: 2, kind: input, shape index: {}]   ;;  %s2867_s3 = inlined_call_operand.vmem [shape: f32[1,128], index: 3, kind: input, shape index: {}]   ;;  %s2868_s4 = inlined_call_operand.vmem [shape: bf16[128,64], index: 4, kind: input, shape index: {}]   ;;  %s2869_s5 = inlined_call_operand.vmem [shape: f32[1,64], index: 5, kind: input, shape index: {}]   ;;  %s2870_s6 = inlined_call_operand.vmem [shape: bf16[64,32], index: 6, kind: input, shape index: {}]   ;;  %s2871_s7 = inlined_call_operand.vmem [shape: f32[1,32], index: 7, kind: input, shape index: {}]   ;;  %s2872_s8 = inlined_call_operand.vmem [shape: bf16[32,128], index: 8, kind: input, shape index: {}]   ;;  %s2873_s9 = inlined_call_operand.vmem [shape: f32[1,128], index: 9, kind: input, shape index: {}]   ;;  %s2874_s10 = inlined_call_operand.vmem [shape: bf16[16,32], index: 10, kind: input, shape index: {}]   ;;  %s2875_s11 = inlined_call_operand.vmem [shape: f32[1,32], index: 11, kind: input, shape index: {}]   ;;  %s2876_s12 = inlined_call_operand.vmem [shape: bf16[32,64], index: 12, kind: input, shape index: {}]   ;;  %s2877_s13 = inlined_call_operand.vmem [shape: f32[1,64], index: 13, kind: input, shape index: {}]   ;;  %s2878_s14 = inlined_call_operand.vmem [shape: bf16[64,128], index: 14, kind: input, shape index: {}]   ;;  %s2879_s15 = inlined_call_operand.vmem [shape: f32[1,128], index: 15, kind: input, shape index: {}]   ;;  %s2880_s16 = inlined_call_operand.vmem [shape: bf16[128,784], index: 16, kind: input, shape index: {}]   ;;  %s2881_s17 = inlined_call_operand.vmem [shape: f32[1,784], index: 17, kind: input, shape index: {}]   ;;  %s2882_s18 = inlined_call_operand.hbm [shape: f32[8,784], index: 18, kind: output, shape index: {0}]   ;;  %s2883_s19 = inlined_call_operand.vmem [shape: f32[8,128], index: 19, kind: output, shape index: {1}]  }
   0x1   :  { %2886 = sst [smem:[#allocation5_spill]] %s2864_s0 }
   0x2   :  { %2887 = sst [smem:[#allocation6_spill]] %s2865_s1 }
   0x3   :  { %2888 = sst [smem:[#allocation7_spill]] %s2866_s2 }
   0x4   :  { %2889 = sst [smem:[#allocation8_spill]] %s2867_s3 }
   0x5   :  { %s2890_s20 = sld [smem:[#allocation7_spill]]  ;;  %s2891_s25 = sld [smem:[#allocation5_spill]]  ;;  %v2265_v44 = vmov 0.0   ;;  %vm2266_vm0 = vmmov 0   ;;  %vm476_vm1 = vcmask 130048  }
   0xb   :  { %v2075_v0 = vld [vmem:[%s2890_s20 + $0x40] sm:$0xff]   ;;  %v2079_v4 = vld [vmem:[%s2890_s20 + $0x48] sm:$0xff]   ;;  %v2083_v8 = vld [vmem:[%s2890_s20 + $0x50] sm:$0xff]  }
   0xc   :  { %v2076_v1 = vld [vmem:[%s2890_s20] sm:$0xff]   ;;  %1874 = vmatprep.subr.bf16.mxu0 %v2075_v0  ;;  %v2080_v5 = vld [vmem:[%s2890_s20 + $0x8] sm:$0xff]   ;;  %v2084_v9 = vld [vmem:[%s2890_s20 + $0x10] sm:$0xff]  }
   0xd   :  { %v2077_v2 = vld [vmem:[%s2890_s20 + $0xc0] sm:$0xff]   ;;  %1875 = vmatpush3.bf16.msra.mxu0 %v2076_v1  ;;  %v2081_v6 = vld [vmem:[%s2890_s20 + $0xc8] sm:$0xff]   ;;  %v2085_v10 = vld [vmem:[%s2890_s20 + $0xd0] sm:$0xff]  }
   0xe   :  { %v2078_v3 = vld [vmem:[%s2890_s20 + $0x80] sm:$0xff]   ;;  %1896 = vmatprep.subr.bf16.mxu1 %v2077_v2  ;;  %1876 = vmatprep.subr.bf16.mxu0 %v2079_v4  ;;  %v2082_v7 = vld [vmem:[%s2890_s20 + $0x88] sm:$0xff]   ;;  %v2086_v11 = vld [vmem:[%s2890_s20 + $0x90] sm:$0xff]  }
   0xf   :  { %1897 = vmatpush3.bf16.msra.mxu1 %v2078_v3  ;;  %v2087_v12 = vld [vmem:[%s2890_s20 + $0x58] sm:$0xff]   ;;  %v2091_v16 = vld [vmem:[%s2890_s20 + $0x60] sm:$0xff]   ;;  %v2095_v20 = vld [vmem:[%s2890_s20 + $0x68] sm:$0xff]  }
  0x10   :  { %1898 = vmatprep.subr.bf16.mxu1 %v2081_v6  ;;  %v2088_v13 = vld [vmem:[%s2890_s20 + $0x18] sm:$0xff]   ;;  %v2092_v17 = vld [vmem:[%s2890_s20 + $0x20] sm:$0xff]   ;;  %v2096_v21 = vld [vmem:[%s2890_s20 + $0x28] sm:$0xff]  }
  0x11   :  { %1877 = vmatpush3.bf16.msra.mxu0 %v2080_v5  ;;  %v2089_v14 = vld [vmem:[%s2890_s20 + $0xd8] sm:$0xff]   ;;  %v2093_v18 = vld [vmem:[%s2890_s20 + $0xe0] sm:$0xff]   ;;  %v2097_v22 = vld [vmem:[%s2890_s20 + $0xe8] sm:$0xff]  }
  0x12   :  { %1878 = vmatprep.subr.bf16.mxu0 %v2083_v8  ;;  %v2090_v15 = vld [vmem:[%s2890_s20 + $0x98] sm:$0xff]   ;;  %v2094_v19 = vld [vmem:[%s2890_s20 + $0xa0] sm:$0xff]   ;;  %v2098_v23 = vld [vmem:[%s2890_s20 + $0xa8] sm:$0xff]  }
  0x13   :  { %1899 = vmatpush3.bf16.msra.mxu1 %v2082_v7  ;;  %v2099_v24 = vld [vmem:[%s2890_s20 + $0x70] sm:$0xff]   ;;  %v2103_v28 = vld [vmem:[%s2890_s20 + $0x78] sm:$0xff]   ;;  %v64_v31 = vld [vmem:[%s2891_s25 + $0x8] sm:$0xff] }
  0x14   :  { %1900 = vmatprep.subr.bf16.mxu1 %v2085_v10  ;;  %v2100_v25 = vld [vmem:[%s2890_s20 + $0x30] sm:$0xff]   ;;  %v2104_v29 = vld [vmem:[%s2890_s20 + $0x38] sm:$0xff]   ;;  %v71_v32 = vpack.c.bf16 %v64_v31, %v64_v31  ;;  %v63_v34 = vld [vmem:[%s2891_s25] sm:$0xff] }
  0x15   :  { %1879 = vmatpush3.bf16.msra.mxu0 %v2084_v9  ;;  %v2101_v26 = vld [vmem:[%s2890_s20 + $0xf0] sm:$0xff]   ;;  %v2105_v30 = vld [vmem:[%s2890_s20 + $0xf8] sm:$0xff]   ;;  %v70_v35 = vpack.c.bf16 %v63_v34, %v63_v34  ;;  %v2107_v36 = vld [vmem:[%s2890_s20 + $0x140] sm:$0xff]  }
  0x16   :  { %1880 = vmatprep.subr.bf16.mxu0 %v2087_v12  ;;  %v2102_v27 = vld [vmem:[%s2890_s20 + $0xb0] sm:$0xff]   ;;  %v2106_v33 = vld [vmem:[%s2890_s20 + $0xb8] sm:$0xff]   ;;  %512 = vmatprep.mubr.bf16.mxu0 %v71_v32  ;;  %v2108_v39 = vld [vmem:[%s2890_s20 + $0x100] sm:$0xff]  }
  0x17   :  { %1901 = vmatpush3.bf16.msra.mxu1 %v2086_v11  ;;  %v66_v37 = vld [vmem:[%s2891_s25 + $0x18] sm:$0xff]  ;;  %v65_v40 = vld [vmem:[%s2891_s25 + $0x10] sm:$0xff]  ;;  %v2109_v42 = vld [vmem:[%s2890_s20 + $0x148] sm:$0xff]  }
  0x18   :  { %1902 = vmatprep.subr.bf16.mxu1 %v2089_v14  ;;  %v73_v38 = vpack.c.bf16 %v66_v37, %v66_v37  ;;  %v72_v41 = vpack.c.bf16 %v65_v40, %v65_v40  ;;  %v2110_v43 = vld [vmem:[%s2890_s20 + $0x108] sm:$0xff]   ;;  %v2111_v45 = vld [vmem:[%s2890_s20 + $0x150] sm:$0xff]   ;;  %v2113_v47 = vld [vmem:[%s2890_s20 + $0x158] sm:$0xff]  }
  0x19   :  { %1881 = vmatpush3.bf16.msra.mxu0 %v2088_v13  ;;  %v2112_v46 = vld [vmem:[%s2890_s20 + $0x110] sm:$0xff]   ;;  %v2114_v48 = vld [vmem:[%s2890_s20 + $0x118] sm:$0xff]   ;;  %v2115_v49 = vld [vmem:[%s2890_s20 + $0x160] sm:$0xff]  }
  0x1a   :  { %1882 = vmatprep.subr.bf16.mxu0 %v2091_v16  ;;  %552 = vmatprep.mubr.bf16.mxu1 %v73_v38  ;;  %v2116_v50 = vld [vmem:[%s2890_s20 + $0x120] sm:$0xff]   ;;  %v2117_v51 = vld [vmem:[%s2890_s20 + $0x168] sm:$0xff]   ;;  %v2119_v55 = vld [vmem:[%s2890_s20 + $0x170] sm:$0xff]  }
  0x1b   :  { %1903 = vmatpush3.bf16.msra.mxu1 %v2090_v15  ;;  %v2118_v52 = vld [vmem:[%s2890_s20 + $0x128] sm:$0xff]   ;;  %v2123_v53 = vld [vmem:[%s2890_s20 + $0x180] sm:$0xff]   ;;  %v69_v57 = vld [vmem:[%s2891_s25 + $0x30] sm:$0xff] }
  0x1c   :  { %1904 = vmatprep.subr.bf16.mxu1 %v2093_v18  ;;  %v68_v54 = vld [vmem:[%s2891_s25 + $0x28] sm:$0xff]  ;;  %v76_v58 = vpack.c.bf16 %v69_v57, %v69_v57  ;;  %v2120_v59 = vld [vmem:[%s2890_s20 + $0x130] sm:$0xff]   ;;  %v2121_v60 = vld [vmem:[%s2890_s20 + $0x178] sm:$0xff]  }
  0x1d   :  { %1883 = vmatpush3.bf16.msra.mxu0 %v2092_v17  ;;  %v75_v56 = vpack.c.bf16 %v68_v54, %v68_v54  ;;  %v2122_v61 = vld [vmem:[%s2890_s20 + $0x138] sm:$0xff]   ;;  %v67_v62 = vld [vmem:[%s2891_s25 + $0x20] sm:$0xff] }
  0x1e   :  { %1884 = vmatprep.subr.bf16.mxu0 %v2095_v20  ;;  %v74_v63 = vpack.c.bf16 %v67_v62, %v67_v62 }
  0x1f   :  { %1905 = vmatpush3.bf16.msra.mxu1 %v2094_v19 }
  0x20   :  { %1906 = vmatprep.subr.bf16.mxu1 %v2097_v22 }
  0x21   :  { %1885 = vmatpush3.bf16.msra.mxu0 %v2096_v21 }
  0x22   :  { %1886 = vmatprep.subr.bf16.mxu0 %v2099_v24 }
  0x23   :  { %1907 = vmatpush3.bf16.msra.mxu1 %v2098_v23 }
  0x24   :  { %1908 = vmatprep.subr.bf16.mxu1 %v2101_v26 }
  0x25   :  { %1887 = vmatpush3.bf16.msra.mxu0 %v2100_v25 }
  0x26   :  { %1888 = vmatprep.subr.bf16.mxu0 %v2103_v28 }
  0x27   :  { %1909 = vmatpush3.bf16.msra.mxu1 %v2102_v27 }
  0x28   :  { %1910 = vmatprep.subr.bf16.mxu1 %v2105_v30 }
  0x29   :  { %1889 = vmatpush3.bf16.msra.mxu0 %v2104_v29 }
  0x2a   :  { %1918 = vmatprep.subr.bf16.mxu0 %v2107_v36 }
  0x2b   :  { %1911 = vmatpush3.bf16.msra.mxu1 %v2106_v33 }
  0x2c   :  { %513 = vmatmul.mubr.bf16.vlgmr.msra.gmra.mrb[0].mxu0 %v70_v35  ;;  %1978 = vmatprep.subr.bf16.mxu1 %v2265_v44 }
  0x2d   :  { %1919 = vmatpush3.bf16.msra.mxu0 %v2108_v39  ;;  %592 = vmatprep.mubr.bf16.mxu0 %v75_v56 }
  0x2e   :  { %553 = vmatmul.mubr.bf16.vlgmr.msra.gmra.mrb[0].mxu1 %v72_v41  ;;  %1920 = vmatprep.subr.bf16.mxu0 %v2109_v42 }
  0x2f   :  { %1980 = vmatprep.mubr.msk.bf16.mxu1 %vm2266_vm0, %v2265_v44  ;;  %1979 = vmatpush3.bf16.msra.mxu1 %v2123_v53 }
  0x30   :  { %1984 = vmatprep.subr.bf16.mxu1 %v2265_v44 }
  0x31   :  { %1921 = vmatpush3.bf16.msra.mxu0 %v2110_v43 }
  0x32   :  { %1922 = vmatprep.subr.bf16.mxu0 %v2111_v45 }
  0x35   :  { %1923 = vmatpush3.bf16.msra.mxu0 %v2112_v46 }
  0x36   :  { %1924 = vmatprep.subr.bf16.mxu0 %v2113_v47  ;;  %1981 = vmatmul.mubr.msk.bf16.vlgmr.msra.gmra.mrb[4].mxu1 %vm476_vm1, %v76_v58 }
  0x37   :  { %2000 = vmatprep.mubr.msk.bf16.mxu1 %vm2266_vm0, %v2265_v44 }
  0x39   :  { %1925 = vmatpush3.bf16.msra.mxu0 %v2114_v48 }
  0x3a   :  { %1926 = vmatprep.subr.bf16.mxu0 %v2115_v49 }
  0x3d   :  { %1927 = vmatpush3.bf16.msra.mxu0 %v2116_v50 }
  0x3e   :  { %1928 = vmatprep.subr.bf16.mxu0 %v2117_v51 }
  0x41   :  { %1929 = vmatpush3.bf16.msra.mxu0 %v2118_v52 }
  0x42   :  { %1930 = vmatprep.subr.bf16.mxu0 %v2119_v55 }
  0x45   :  { %1931 = vmatpush3.bf16.msra.mxu0 %v2120_v59 }
  0x46   :  { %1932 = vmatprep.subr.bf16.mxu0 %v2121_v60 }
  0x49   :  { %1933 = vmatpush3.bf16.msra.mxu0 %v2122_v61 }
  0x4a   :  { %2004 = vmatprep.subr.bf16.mxu0 %v2265_v44 }
  0x4c   :  { %593 = vmatmul.mubr.bf16.vlgmr.msra.gmra.mrb[4].mxu0 %v74_v63 }
  0x4d   :  { %2012 = vmatprep.mubr.msk.bf16.mxu0 %vm2266_vm0, %v2265_v44 }
  0x4e   :  { %25 = vsyncpa [#allocation3], 0  ;;  %v2124_v0 = vld [vmem:[%s2868_s4] sm:$0xff]   ;;  %v2125_v1 = vld [vmem:[%s2868_s4 + $0x8] sm:$0xff]   ;;  %s2892_s3 = sld [smem:[#allocation8_spill]]  ;;  %vm794_vm2 = vcmask 523264  }
  0x4f   :  { %1985 = vmatpush3.bf16.msra.mxu1 %v2124_v0  ;;  %v2126_v2 = vld [vmem:[%s2868_s4 + $0x10] sm:$0xff]   ;;  %v2127_v3 = vld [vmem:[%s2868_s4 + $0x18] sm:$0xff]   ;;  %v2128_v4 = vld [vmem:[%s2868_s4 + $0x20] sm:$0xff]   ;;  %vm862_vm3 = vcmask 261120   ;;  %s2893_s26 = sld [smem:[#allocation6_spill]] }
  0x50   :  { %1986 = vmatprep.subr.bf16.mxu1 %v2265_v44  ;;  %v2129_v5 = vld [vmem:[%s2868_s4 + $0x28] sm:$0xff]   ;;  %v2130_v6 = vld [vmem:[%s2868_s4 + $0x30] sm:$0xff]   ;;  %v2131_v7 = vld [vmem:[%s2868_s4 + $0x38] sm:$0xff]  }
  0x51   :  { %v2132_v8 = vld [vmem:[%s2870_s6] sm:$0xff]   ;;  %v2133_v9 = vld [vmem:[%s2870_s6 + $0x8] sm:$0xff]   ;;  %v2134_v36 = vld [vmem:[%s2870_s6 + $0x10] sm:$0xff]  }
  0x52   :  { %2005 = vmatpush3.bf16.msra.mxu0 %v2132_v8  ;;  %v2135_v37 = vld [vmem:[%s2870_s6 + $0x18] sm:$0xff]   ;;  %v2136_v38 = vld [vmem:[%s2872_s8] sm:$0xff]   ;;  %v2137_v48 = vld [vmem:[%s2872_s8 + $0x8] sm:$0xff]  }
  0x53   :  { %1987 = vmatpush3.bf16.msra.mxu1 %v2125_v1  ;;  %2006 = vmatprep.subr.bf16.mxu0 %v2265_v44  ;;  %v1786_v39 = vld [vmem:[%s2869_s5] ss:$0 sm:$0xff]  ;;  %v2140_v8 = vld [vmem:[%s2876_s12 + $0x8] sm:$0xff]  }
  0x54   :  { %1988 = vmatprep.subr.bf16.mxu1 %v2265_v44  ;;  %v1735_v11 = vld [vmem:[%s2892_s3] ss:$0 sm:$0xff] }
  0x55   :  { %v1795_v49 = vld [vmem:[%s2871_s7] ss:$0 sm:$0xff] }
  0x56   :  { %2007 = vmatpush3.bf16.msra.mxu0 %v2133_v9  ;;  %v2138_v56 = vld [vmem:[%s2874_s10] sm:$0xff]   ;;  %s2267_s10 = smov 112  }
  0x57   :  { %1989 = vmatpush3.bf16.msra.mxu1 %v2126_v2  ;;  %2008 = vmatprep.subr.bf16.mxu0 %v2265_v44  ;;  %v1801_v57 = vld [vmem:[%s2873_s9] ss:$0 sm:$0xff] }
  0x58   :  { %1990 = vmatprep.subr.bf16.mxu1 %v2265_v44  ;;  %v909_v2 = vld [vmem:[%s2893_s26] sm:$0xff] }
  0x59   :  { %v2141_v9 = vld [vmem:[%s2878_s14] sm:$0xff]  }
  0x5a   :  { %2009 = vmatpush3.bf16.msra.mxu0 %v2134_v36  ;;  %v1808_v36 = vld [vmem:[%s2877_s13] ss:$0 sm:$0xff] }
  0x5b   :  { %1991 = vmatpush3.bf16.msra.mxu1 %v2127_v3  ;;  %2010 = vmatprep.subr.bf16.mxu0 %v2265_v44 }
  0x5c   :  { %1992 = vmatprep.subr.bf16.mxu1 %v2265_v44 }
  0x5e   :  { %2011 = vmatpush3.bf16.msra.mxu0 %v2135_v37 }
  0x5f   :  { %1993 = vmatpush3.bf16.msra.mxu1 %v2128_v4  ;;  %2038 = vmatprep.subr.bf16.mxu0 %v2265_v44 }
  0x60   :  { %1994 = vmatprep.subr.bf16.mxu1 %v2265_v44 }
  0x63   :  { %1995 = vmatpush3.bf16.msra.mxu1 %v2129_v5 }
  0x64   :  { %1996 = vmatprep.subr.bf16.mxu1 %v2265_v44 }
  0x67   :  { %1997 = vmatpush3.bf16.msra.mxu1 %v2130_v6  ;;  %v2139_v6 = vld [vmem:[%s2876_s12] sm:$0xff]  }
  0x68   :  { %1998 = vmatprep.subr.bf16.mxu1 %v2265_v44 }
  0x6b   :  { %1999 = vmatpush3.bf16.msra.mxu1 %v2131_v7 }
  0x6c   :  { %2016 = vmatprep.subr.bf16.mxu1 %v2265_v44 }
  0xff   :  { %v1890_v10 = vpop.f32.mrb[0].mxu0 }
 0x100   :  { %v1891_v12 = vpop.f32.mrb[1].mxu0 }
 0x101   :  { %v1892_v13 = vadd.f32 %v1891_v12, %v1890_v10  ;;  %v1893_v14 = vpop.f32.mrb[2].mxu0  ;;  %v1912_v15 = vpop.f32.mrb[0].mxu1  ;;  %v2142_v10 = vld [vmem:[%s2878_s14 + $0x8] sm:$0xff]  }
 0x102   :  { %v1894_v16 = vpop.f32.mrb[3].mxu0  ;;  %v1913_v18 = vpop.f32.mrb[1].mxu1 }
 0x103   :  { %v515_v17 = vadd.f32 %v1892_v13, %v1735_v11  ;;  %v1914_v19 = vadd.f32 %v1913_v18, %v1912_v15  ;;  %v1915_v20 = vpop.f32.mrb[2].mxu1  ;;  %v1805_v11 = vld [vmem:[%s2875_s11] ss:$0 sm:$0xff] }
 0x104   :  { %v1916_v21 = vpop.f32.mrb[3].mxu1  ;;  %v2144_v20 = vld [vmem:[%s2878_s14 + $0x18] sm:$0xff]  }
 0x105   :  { %v555_v22 = vadd.f32 %v1914_v19, %v515_v17  ;;  %v2143_v19 = vld [vmem:[%s2878_s14 + $0x10] sm:$0xff]   ;;  %v2145_v21 = vld [vmem:[%s2880_s16] ss:$28 sps:$4 sm:$0xff]  }
 0x109   :  { %v634_v23 = vpop.f32.mrb[4].mxu1 }
 0x10a   :  { %v1982_v24 = vpop.f32.mrb[5].mxu1 }
 0x10b   :  { %v637_v25 = vpop.f32.mrb[6].mxu1  ;;  %v2153_v24 = vld [vmem:[%s2880_s16 + $0x3c] ss:$28 sps:$4 sm:$0xff]  }
 0x10c   :  { %v1983_v26 = vpop.f32.mrb[7].mxu1  ;;  %v2151_v25 = vld [vmem:[%s2880_s16 + $0x38] ss:$28 sps:$4 sm:$0xff]  }
 0x10d   :  { %v2159_v26 = vld [vmem:[%s2880_s16 + $0x74] ss:$28 sps:$4 sm:$0xff]  }
 0x11f   :  { %v1934_v27 = vpop.f32.mrb[4].mxu0 }
 0x120   :  { %v1935_v28 = vpop.f32.mrb[5].mxu0 }
 0x121   :  { %v1936_v29 = vadd.f32 %v1935_v28, %v1934_v27  ;;  %v1937_v30 = vpop.f32.mrb[6].mxu0  ;;  %v2157_v27 = vld [vmem:[%s2880_s16 + $0x70] ss:$28 sps:$4 sm:$0xff]  }
 0x122   :  { %v1938_v31 = vpop.f32.mrb[7].mxu0  ;;  %v2165_v28 = vld [vmem:[%s2880_s16 + $0xac] ss:$28 sps:$4 sm:$0xff]   ;;  %v2171_v30 = vld [vmem:[%s2880_s16 + $0xe4] ss:$28 sps:$4 sm:$0xff]  }
 0x123   :  { %v595_v32 = vadd.f32 %v1936_v29, %v555_v22  ;;  %v2147_v22 = vld [vmem:[%s2880_s16 + $0x4] ss:$28 sps:$4 sm:$0xff]  }
 0x124   :  { %v2163_v29 = vld [vmem:[%s2880_s16 + $0xa8] ss:$28 sps:$4 sm:$0xff]   ;;  %v2169_v31 = vld [vmem:[%s2880_s16 + $0xe0] ss:$28 sps:$4 sm:$0xff]  }
 0x125   :  { %v635_v33 = vadd.f32 %v634_v23, %v595_v32  ;;  %v2150_v23 = vld [vmem:[%s2880_s16 + $0xc] ss:$28 sps:$4 sm:$0xff]   ;;  %v2177_v32 = vld [vmem:[%s2880_s16 + $0x11c] ss:$28 sps:$4 sm:$0xff]  }
 0x127   :  { %v640_v34 = vmax.f32 %v635_v33, 0.0  ;;  %v2175_v33 = vld [vmem:[%s2880_s16 + $0x118] ss:$28 sps:$4 sm:$0xff]  }
 0x129   :  { %v641_v35 = vpack.c.bf16 %v640_v34, %v640_v34  ;;  %v2183_v34 = vld [vmem:[%s2880_s16 + $0x154] ss:$28 sps:$4 sm:$0xff]  }
 0x12b   :  { %2001 = vmatmul.mubr.bf16.vlgmr.msra.gmra.mrb[8].mxu1 %v641_v35  ;;  %v2181_v35 = vld [vmem:[%s2880_s16 + $0x150] ss:$28 sps:$4 sm:$0xff]  }
 0x12c   :  { %2020 = vmatprep.mubr.msk.bf16.mxu1 %vm2266_vm0, %v2265_v44  ;;  %2017 = vmatpush3.bf16.msra.mxu1 %v2136_v38 }
 0x12d   :  { %2018 = vmatprep.subr.bf16.mxu1 %v2265_v44 }
 0x130   :  { %2019 = vmatpush3.bf16.msra.mxu1 %v2137_v48  ;;  %v2162_v48 = vld [vmem:[%s2880_s16 + $0x7c] ss:$28 sps:$4 sm:$0xff]  }
 0x131   :  { %2024 = vmatprep.subr.bf16.mxu1 %v2265_v44 }
 0x1fe   :  { %v747_v40 = vpop.f32.mrb[8].mxu1 }
 0x1ff   :  { %v748_v41 = vadd.f32 %v1786_v39, %v747_v40  ;;  %v2002_v42 = vpop.f32.mrb[9].mxu1 }
 0x200   :  { %v750_v43 = vpop.f32.mrb[10].mxu1 }
 0x201   :  { %v753_v45 = vmax.f32 %v748_v41, 0.0  ;;  %v2003_v46 = vpop.f32.mrb[11].mxu1  ;;  %v2148_v43 = vld [vmem:[%s2880_s16 + $0x8] ss:$28 sps:$4 sm:$0xff]  }
 0x202   :  { %v2156_v46 = vld [vmem:[%s2880_s16 + $0x44] ss:$28 sps:$4 sm:$0xff]  }
 0x203   :  { %v754_v47 = vpack.c.bf16 %v753_v45, %v753_v45 }
 0x205   :  { %2013 = vmatmul.mubr.msk.bf16.vlgmr.msra.gmra.mrb[8].mxu0 %vm794_vm2, %v754_v47  ;;  %v2154_v47 = vld [vmem:[%s2880_s16 + $0x40] ss:$28 sps:$4 sm:$0xff]  }
 0x206   :  { %2046 = vmatprep.mubr.msk.bf16.mxu0 %vm2266_vm0, %v2265_v44  ;;  %2039 = vmatpush3.bf16.msra.mxu0 %v2141_v9 }
 0x207   :  { %2040 = vmatprep.subr.bf16.mxu0 %v2265_v44 }
 0x20a   :  { %2041 = vmatpush3.bf16.msra.mxu0 %v2142_v10  ;;  %v2199_v10 = vld [vmem:[%s2880_s16 + $0x4c] ss:$28 sps:$4 sm:$0xff]  }
 0x20b   :  { %2042 = vmatprep.subr.bf16.mxu0 %v2265_v44 }
 0x20e   :  { %2043 = vmatpush3.bf16.msra.mxu0 %v2143_v19  ;;  %v2211_v19 = vld [vmem:[%s2880_s16 + $0xf4] ss:$28 sps:$4 sm:$0xff]  }
 0x20f   :  { %2044 = vmatprep.subr.bf16.mxu0 %v2265_v44 }
 0x212   :  { %2045 = vmatpush3.bf16.msra.mxu0 %v2144_v20  ;;  %v2209_v20 = vld [vmem:[%s2880_s16 + $0xf0] ss:$28 sps:$4 sm:$0xff]  }
 0x213   :  { %1559 = vmatprep.subr.bf16.mxu0 %v2150_v23  ;;  %v2213_v23 = vld [vmem:[%s2880_s16 + $0x128] ss:$28 sps:$4 sm:$0xff]  }
 0x2d8   :  { %v832_v50 = vpop.f32.mrb[8].mxu0 }
 0x2d9   :  { %v833_v51 = vadd.f32 %v1795_v49, %v832_v50  ;;  %v2014_v52 = vpop.f32.mrb[9].mxu0  ;;  %v2160_v49 = vld [vmem:[%s2880_s16 + $0x78] ss:$28 sps:$4 sm:$0xff]  }
 0x2da   :  { %v835_v53 = vpop.f32.mrb[10].mxu0  ;;  %v2168_v50 = vld [vmem:[%s2880_s16 + $0xb4] ss:$28 sps:$4 sm:$0xff]   ;;  %v2174_v52 = vld [vmem:[%s2880_s16 + $0xec] ss:$28 sps:$4 sm:$0xff]  }
 0x2db   :  { %v838_v54 = vpack.c.bf16 %v833_v51, %v833_v51  ;;  %v2015_v55 = vpop.f32.mrb[11].mxu0  ;;  %v2166_v51 = vld [vmem:[%s2880_s16 + $0xb0] ss:$28 sps:$4 sm:$0xff]   ;;  %v2172_v53 = vld [vmem:[%s2880_s16 + $0xe8] ss:$28 sps:$4 sm:$0xff]  }
 0x2dc   :  { %v2178_v55 = vld [vmem:[%s2880_s16 + $0x120] ss:$28 sps:$4 sm:$0xff]  }
 0x2dd   :  { %2021 = vmatmul.mubr.msk.bf16.vlgmr.msra.gmra.mrb[12].mxu1 %vm862_vm3, %v838_v54  ;;  %v2180_v54 = vld [vmem:[%s2880_s16 + $0x124] ss:$28 sps:$4 sm:$0xff]  }
 0x2de   :  { %2026 = vmatprep.mubr.msk.bf16.mxu1 %vm2266_vm0, %v2265_v44  ;;  %2025 = vmatpush3.bf16.msra.mxu1 %v2138_v56  ;;  %v2186_v56 = vld [vmem:[%s2880_s16 + $0x15c] ss:$28 sps:$4 sm:$0xff]  }
 0x2df   :  { %2030 = vmatprep.subr.bf16.mxu1 %v2265_v44 }
 0x3b0   :  { %v900_v58 = vpop.f32.mrb[12].mxu1 }
 0x3b1   :  { %v901_v59 = vadd.f32 %v1801_v57, %v900_v58  ;;  %v2022_v60 = vpop.f32.mrb[13].mxu1  ;;  %v2184_v57 = vld [vmem:[%s2880_s16 + $0x158] ss:$28 sps:$4 sm:$0xff]   ;;  %v2189_v58 = vld [vmem:[%s2880_s16 + $0x18c] ss:$28 sps:$4 sm:$0xff]  }
 0x3b2   :  { %v903_v61 = vpop.f32.mrb[14].mxu1  ;;  %v2187_v60 = vld [vmem:[%s2880_s16 + $0x188] ss:$28 sps:$4 sm:$0xff]  }
 0x3b3   :  { %v906_v62 = vmul.f32 0.5, %v901_v59  ;;  %1716 = vst [vmem:[%s2883_s19] sm:$0xff] %v901_v59  ;;  %v2023_v63 = vpop.f32.mrb[15].mxu1  ;;  %v2190_v61 = vld [vmem:[%s2880_s16 + $0x190] ss:$28 sps:$4 sm:$0xff]  }
 0x3b4   :  { %v2268_v63 = vmov 0  }
 0x3b5   :  { %v907_v0 = vmul.f32 1.442695, %v906_v62  ;;  %v2195_v62 = vld [vmem:[%s2880_s16 + $0x14] ss:$28 sps:$4 sm:$0xff]  }
 0x3b7   :  { %2225 = vpow2.f32 %v907_v0  ;;  %v1812_v0 = vld [vmem:[%s2879_s15] ss:$0 sm:$0xff] }
 0x3c1   :  { %v2226_v1 = vpop.eup %2225 }
 0x3c2   :  { %911 = vrot.lane.b32.xlu0 %v2226_v1, %s2267_s10 }
 0x434   :  { %v912_v3 = vpop.permute.xlu0 %911 }
 0x435   :  { %v914_v4 = vmul.f32 %v912_v3, %v909_v2 }
 0x437   :  { %v915_v5 = vadd.f32 %v914_v4, %v901_v59  ;;  %v2192_v59 = vld [vmem:[%s2880_s16 + $0x194] ss:$28 sps:$4 sm:$0xff]  }
 0x439   :  { %v916_v7 = vpack.c.bf16 %v915_v5, %v915_v5 }
 0x43b   :  { %2027 = vmatmul.mubr.msk.bf16.vlgmr.msra.gmra.mrb[16].mxu1 %vm476_vm1, %v916_v7  ;;  %v2193_v7 = vld [vmem:[%s2880_s16 + $0x10] ss:$28 sps:$4 sm:$0xff]  }
 0x43c   :  { %2031 = vmatpush3.bf16.msra.mxu1 %v2139_v6  ;;  %2034 = vmatprep.mubr.msk.bf16.mxu1 %vm2266_vm0, %v2265_v44 }
 0x43d   :  { %2032 = vmatprep.subr.bf16.mxu1 %v2265_v44 }
 0x440   :  { %2033 = vmatpush3.bf16.msra.mxu1 %v2140_v8  ;;  %v2196_v8 = vld [vmem:[%s2880_s16 + $0x18] ss:$28 sps:$4 sm:$0xff]  }
 0x441   :  { %1518 = vmatprep.subr.bf16.mxu1 %v2147_v22  ;;  %v2215_v22 = vld [vmem:[%s2880_s16 + $0x12c] ss:$28 sps:$4 sm:$0xff]  }
 0x50e   :  { %v969_v12 = vpop.f32.mrb[16].mxu1 }
 0x50f   :  { %v970_v13 = vadd.f32 %v1805_v11, %v969_v12  ;;  %v2028_v14 = vpop.f32.mrb[17].mxu1  ;;  %v2197_v11 = vld [vmem:[%s2880_s16 + $0x48] ss:$28 sps:$4 sm:$0xff]   ;;  %v2200_v12 = vld [vmem:[%s2880_s16 + $0x50] ss:$28 sps:$4 sm:$0xff]  }
 0x510   :  { %v972_v15 = vpop.f32.mrb[18].mxu1  ;;  %v2201_v14 = vld [vmem:[%s2880_s16 + $0x80] ss:$28 sps:$4 sm:$0xff]  }
 0x511   :  { %v975_v16 = vmax.f32 %v970_v13, 0.0  ;;  %v2029_v17 = vpop.f32.mrb[19].mxu1  ;;  %v2203_v13 = vld [vmem:[%s2880_s16 + $0x84] ss:$28 sps:$4 sm:$0xff]  }
 0x512   :  { %v2204_v15 = vld [vmem:[%s2880_s16 + $0x88] ss:$28 sps:$4 sm:$0xff]   ;;  %v2205_v17 = vld [vmem:[%s2880_s16 + $0xb8] ss:$28 sps:$4 sm:$0xff]  }
 0x513   :  { %v976_v18 = vpack.c.bf16 %v975_v16, %v975_v16  ;;  %v2207_v16 = vld [vmem:[%s2880_s16 + $0xbc] ss:$28 sps:$4 sm:$0xff]  }
 0x515   :  { %2035 = vmatmul.mubr.msk.bf16.vlgmr.msra.gmra.mrb[20].mxu1 %vm862_vm3, %v976_v18  ;;  %v2208_v18 = vld [vmem:[%s2880_s16 + $0xc0] ss:$28 sps:$4 sm:$0xff]  }
 0x516   :  { %1519 = vmatpush1.bf16.msra.mxu1 %v2145_v21  ;;  %1550 = vmatprep.mubr.bf16.mxu1 %v2268_v63  ;;  %v2212_v21 = vld [vmem:[%s2880_s16 + $0xf8] ss:$28 sps:$4 sm:$0xff]  }
 0x517   :  { %1520 = vmatprep.subr.bf16.mxu1 %v2153_v24  ;;  %v2216_v24 = vld [vmem:[%s2880_s16 + $0x130] ss:$28 sps:$4 sm:$0xff]  }
 0x51a   :  { %1521 = vmatpush1.bf16.msra.mxu1 %v2151_v25  ;;  %v2219_v25 = vld [vmem:[%s2880_s16 + $0x164] ss:$28 sps:$4 sm:$0xff]  }
 0x51b   :  { %1522 = vmatprep.subr.bf16.mxu1 %v2159_v26  ;;  %v2217_v26 = vld [vmem:[%s2880_s16 + $0x160] ss:$28 sps:$4 sm:$0xff]  }
 0x51e   :  { %1523 = vmatpush1.bf16.msra.mxu1 %v2157_v27  ;;  %v2220_v27 = vld [vmem:[%s2880_s16 + $0x168] ss:$28 sps:$4 sm:$0xff]  }
 0x51f   :  { %1524 = vmatprep.subr.bf16.mxu1 %v2165_v28  ;;  %v2223_v28 = vld [vmem:[%s2880_s16 + $0x19c] ss:$28 sps:$4 sm:$0xff]  }
 0x522   :  { %1525 = vmatpush1.bf16.msra.mxu1 %v2163_v29  ;;  %v2221_v29 = vld [vmem:[%s2880_s16 + $0x198] ss:$28 sps:$4 sm:$0xff]  }
 0x523   :  { %1526 = vmatprep.subr.bf16.mxu1 %v2171_v30  ;;  %v2224_v30 = vld [vmem:[%s2880_s16 + $0x1a0] ss:$28 sps:$4 sm:$0xff]   ;;  %s2269_s16 = smov [#allocation2]  }
 0x526   :  { %1527 = vmatpush1.bf16.msra.mxu1 %v2169_v31  ;;  %v1195_v31 = vlaneseq }
 0x527   :  { %1528 = vmatprep.subr.bf16.mxu1 %v2177_v32 }
 0x528   :  { %v1196_v32 = vshrl.u32 %v1195_v31, 7 }
 0x52a   :  { %1529 = vmatpush1.bf16.msra.mxu1 %v2175_v33  ;;  %v1197_v33 = vsub.s32 0, %v1196_v32 }
 0x52b   :  { %1530 = vmatprep.subr.bf16.mxu1 %v2183_v34  ;;  %v1205_v34 = vsub.s32 2, %v1196_v32 }
 0x52e   :  { %1531 = vmatpush1.bf16.msra.mxu1 %v2181_v35  ;;  %v1193_v35 = vld [vmem:[%s2881_s17] sm:$0x7f]  ;;  %s1723_s17 = sshll.u32 %s2269_s16, 4  ;;  %s1724_s17 = int_to_ptr.vmem [resolvable:$true] %s1723_s17 }
 0x52f   :  { %1532 = vmatprep.subr.bf16.mxu1 %v2189_v58  ;;  %s2241_s4 = scalar_lea.vmem %s1724_s17, 896  ;;  %p2246_p1 = scmp.lt.s32.totalorder %s1724_s17, %s1724_s17 }
 0x530   :  { %p2242_p0 = scmp.ne.s32.totalorder %s1724_s17, %s2241_s4  ;;  %p2247_p2 = scmp.lt.s32.totalorder %s2241_s4, %s2241_s4 }
 0x532   :  { %1533 = vmatpush1.bf16.msra.mxu1 %v2187_v60  ;;  %p2248_p3 = por %p2247_p2, %p2246_p1 }
 0x533   :  { %1600 = vmatprep.subr.bf16.mxu1 %v2195_v62 }
 0x534   :  { %p2249_p4 = pnand %p2248_p3, %p2242_p0 }
 0x5e8   :  { %v1037_v37 = vpop.f32.mrb[20].mxu1 }
 0x5e9   :  { %v1038_v38 = vadd.f32 %v1808_v36, %v1037_v37  ;;  %v2036_v39 = vpop.f32.mrb[21].mxu1  ;;  %v1201_v36 = vsub.s32 1, %v1196_v32  ;;  %v1209_v37 = vsub.s32 3, %v1196_v32 }
 0x5ea   :  { %v1040_v40 = vpop.f32.mrb[22].mxu1  ;;  %v1206_v39 = vrot.slane %v1193_v35, %v1205_v34 }
 0x5eb   :  { %v1043_v41 = vmax.f32 %v1038_v38, 0.0  ;;  %v2037_v42 = vpop.f32.mrb[23].mxu1  ;;  %v1198_v38 = vrot.slane %v1193_v35, %v1197_v33  ;;  %v1202_v40 = vrot.slane %v1193_v35, %v1201_v36 }
 0x5ed   :  { %v1044_v45 = vpack.c.bf16 %v1043_v41, %v1043_v41  ;;  %v1210_v41 = vrot.slane %v1193_v35, %v1209_v37 }
 0x5ef   :  { %2047 = vmatmul.mubr.msk.bf16.vlgmr.msra.gmra.mrb[12].mxu0 %vm794_vm2, %v1044_v45 }
 0x5f0   :  { %1560 = vmatpush1.bf16.msra.mxu0 %v2148_v43  ;;  %1591 = vmatprep.mubr.bf16.mxu0 %v2268_v63 }
 0x5f1   :  { %1561 = vmatprep.subr.bf16.mxu0 %v2156_v46 }
 0x5f4   :  { %1562 = vmatpush1.bf16.msra.mxu0 %v2154_v47 }
 0x5f5   :  { %1563 = vmatprep.subr.bf16.mxu0 %v2162_v48 }
 0x5f8   :  { %1564 = vmatpush1.bf16.msra.mxu0 %v2160_v49 }
 0x5f9   :  { %1565 = vmatprep.subr.bf16.mxu0 %v2168_v50 }
 0x5fc   :  { %1566 = vmatpush1.bf16.msra.mxu0 %v2166_v51 }
 0x5fd   :  { %1567 = vmatprep.subr.bf16.mxu0 %v2174_v52 }
 0x600   :  { %1568 = vmatpush1.bf16.msra.mxu0 %v2172_v53 }
 0x601   :  { %1569 = vmatprep.subr.bf16.mxu0 %v2180_v54 }
 0x604   :  { %1570 = vmatpush1.bf16.msra.mxu0 %v2178_v55 }
 0x605   :  { %1571 = vmatprep.subr.bf16.mxu0 %v2186_v56 }
 0x608   :  { %1572 = vmatpush1.bf16.msra.mxu0 %v2184_v57 }
 0x609   :  { %1573 = vmatprep.subr.bf16.mxu0 %v2192_v59 }
 0x60c   :  { %1574 = vmatpush1.bf16.msra.mxu0 %v2190_v61 }
 0x60d   :  { %2050 = vmatprep.subr.bf16.mxu0 %v2265_v44 }
 0x6c2   :  { %v1121_v1 = vpop.f32.mrb[12].mxu0 }
 0x6c3   :  { %v1122_v2 = vadd.f32 %v1812_v0, %v1121_v1  ;;  %v2048_v3 = vpop.f32.mrb[13].mxu0 }
 0x6c4   :  { %v1124_v4 = vpop.f32.mrb[14].mxu0 }
 0x6c5   :  { %v1127_v5 = vmax.f32 %v1122_v2, 0.0  ;;  %v2049_v6 = vpop.f32.mrb[15].mxu0 }
 0x6c6   :  { %v1213_v6 = vsub.s32 4, %v1196_v32 }
 0x6c7   :  { %v1128_v9 = vpack.c.bf16 %v1127_v5, %v1127_v5 }
 0x6c9   :  { %1551 = vmatmul.mubr.bf16.vlgmr.msra.gmra.mrb[24].mxu1 %v1128_v9  ;;  %1592 = vmatmul.mubr.bf16.vlgmr.msra.gmra.mrb[16].mxu0 %v1128_v9 }
 0x6ca   :  { %1601 = vmatpush1.bf16.msra.mxu1 %v2193_v7  ;;  %2051 = vmatpush3.bf16.msra.mxu0 %v2196_v8  ;;  %v1221_v7 = vsub.s32 6, %v1196_v32  ;;  %v1217_v8 = vsub.s32 5, %v1196_v32 }
 0x6cb   :  { %1602 = vmatprep.subr.bf16.mxu1 %v2199_v10  ;;  %2052 = vmatprep.subr.bf16.mxu0 %v2265_v44 }
 0x6cc   :  { %1632 = vmatprep.mubr.bf16.mxu1 %v2268_v63  ;;  %2066 = vmatprep.mubr.msk.bf16.mxu0 %vm2266_vm0, %v2265_v44  ;;  %v1222_v10 = vrot.slane %v1193_v35, %v1221_v7 }
 0x6ce   :  { %1603 = vmatpush1.bf16.msra.mxu1 %v2197_v11  ;;  %2053 = vmatpush3.bf16.msra.mxu0 %v2200_v12  ;;  %v1218_v11 = vrot.slane %v1193_v35, %v1217_v8 }
 0x6cf   :  { %1604 = vmatprep.subr.bf16.mxu1 %v2203_v13  ;;  %2054 = vmatprep.subr.bf16.mxu0 %v2265_v44 }
 0x6d2   :  { %1605 = vmatpush1.bf16.msra.mxu1 %v2201_v14  ;;  %2055 = vmatpush3.bf16.msra.mxu0 %v2204_v15 }
 0x6d3   :  { %1606 = vmatprep.subr.bf16.mxu1 %v2207_v16  ;;  %2056 = vmatprep.subr.bf16.mxu0 %v2265_v44 }
 0x6d6   :  { %1607 = vmatpush1.bf16.msra.mxu1 %v2205_v17  ;;  %2057 = vmatpush3.bf16.msra.mxu0 %v2208_v18 }
 0x6d7   :  { %1608 = vmatprep.subr.bf16.mxu1 %v2211_v19  ;;  %2058 = vmatprep.subr.bf16.mxu0 %v2265_v44 }
 0x6da   :  { %1609 = vmatpush1.bf16.msra.mxu1 %v2209_v20  ;;  %2059 = vmatpush3.bf16.msra.mxu0 %v2212_v21 }
 0x6db   :  { %1610 = vmatprep.subr.bf16.mxu1 %v2215_v22  ;;  %2060 = vmatprep.subr.bf16.mxu0 %v2265_v44 }
 0x6de   :  { %1611 = vmatpush1.bf16.msra.mxu1 %v2213_v23  ;;  %2061 = vmatpush3.bf16.msra.mxu0 %v2216_v24 }
 0x6df   :  { %1612 = vmatprep.subr.bf16.mxu1 %v2219_v25  ;;  %2062 = vmatprep.subr.bf16.mxu0 %v2265_v44 }
 0x6e2   :  { %1613 = vmatpush1.bf16.msra.mxu1 %v2217_v26  ;;  %2063 = vmatpush3.bf16.msra.mxu0 %v2220_v27 }
 0x6e3   :  { %1614 = vmatprep.subr.bf16.mxu1 %v2223_v28  ;;  %2064 = vmatprep.subr.bf16.mxu0 %v2265_v44 }
 0x6e6   :  { %1615 = vmatpush1.bf16.msra.mxu1 %v2221_v29  ;;  %2065 = vmatpush3.bf16.msra.mxu0 %v2224_v30 }
 0x6e9   :  { %1633 = vmatmul.mubr.bf16.vlgmr.msra.gmra.mrb[28].mxu1 %v1128_v9  ;;  %2067 = vmatmul.mubr.bf16.vlgmr.msra.gmra.mrb[20].mxu0 %v1128_v9  ;;  %v1214_v9 = vrot.slane %v1193_v35, %v1213_v6 }
 0x79c   :  { %v1552_v42 = vpop.f32.mrb[24].mxu1  ;;  %v1593_v44 = vpop.f32.mrb[16].mxu0 }
 0x79d   :  { %v1553_v43 = vadd.f32 %v1552_v42, %v1198_v38  ;;  %v1594_v45 = vadd.f32 %v1593_v44, %v1206_v39  ;;  %v1554_v46 = vpop.f32.mrb[25].mxu1  ;;  %v1595_v47 = vpop.f32.mrb[17].mxu0 }
 0x79e   :  { %v1555_v48 = vadd.f32 %v1554_v46, %v1202_v40  ;;  %v1596_v49 = vadd.f32 %v1595_v47, %v1210_v41  ;;  %v1556_v50 = vpop.f32.mrb[26].mxu1  ;;  %v1597_v51 = vpop.f32.mrb[18].mxu0 }
 0x79f   :  { %v1681_v52 = vmul.f32 0.5, %v1553_v43  ;;  %v1683_v53 = vmul.f32 0.5, %v1594_v45  ;;  %v1557_v54 = vpop.f32.mrb[27].mxu1  ;;  %v1598_v55 = vpop.f32.mrb[19].mxu0 }
 0x7a0   :  { %v1682_v56 = vmul.f32 0.5, %v1555_v48  ;;  %v1684_v57 = vmul.f32 0.5, %v1596_v49 }
 0x7a1   :  { %2227 = vtanh.f32 %v1681_v52 }
 0x7a2   :  { %2229 = vtanh.f32 %v1683_v53 }
 0x7a3   :  { %2231 = vtanh.f32 %v1682_v56 }
 0x7a4   :  { %2233 = vtanh.f32 %v1684_v57 }
 0x7ab   :  { %v2228_v58 = vpop.eup %2227 }
 0x7ac   :  { %v2230_v59 = vpop.eup %2229  ;;  %v1695_v60 = vadd.f32 1.0, %v2228_v58 }
 0x7ad   :  { %v2232_v61 = vpop.eup %2231  ;;  %v1697_v62 = vadd.f32 1.0, %v2230_v59 }
 0x7ae   :  { %v2234_v63 = vpop.eup %2233  ;;  %v1702_v0 = vmul.f32 0.5, %v1695_v60  ;;  %v1696_v1 = vadd.f32 1.0, %v2232_v61 }
 0x7af   :  { %v1704_v2 = vmul.f32 0.5, %v1697_v62  ;;  %v1698_v3 = vadd.f32 1.0, %v2234_v63 }
 0x7b0   :  { %1709 = vst [vmem:[#allocation2] sm:$0xff] %v1702_v0  ;;  %v1703_v4 = vmul.f32 0.5, %v1696_v1 }
 0x7b1   :  { %1711 = vst [vmem:[#allocation2 + $0x10] sm:$0xff] %v1704_v2  ;;  %v1705_v5 = vmul.f32 0.5, %v1698_v3 }
 0x7b2   :  { %1710 = vst [vmem:[#allocation2 + $0x8] sm:$0xff] %v1703_v4 }
 0x7b3   :  { %1712 = vst [vmem:[#allocation2 + $0x18] sm:$0xff] %v1705_v5 }
 0x7bc   :  { %v1634_v12 = vpop.f32.mrb[28].mxu1  ;;  %v1675_v13 = vpop.f32.mrb[20].mxu0 }
 0x7bd   :  { %v1635_v14 = vadd.f32 %v1634_v12, %v1214_v9  ;;  %v1676_v15 = vadd.f32 %v1675_v13, %v1222_v10  ;;  %v1636_v16 = vpop.f32.mrb[29].mxu1  ;;  %v2068_v17 = vpop.f32.mrb[21].mxu0 }
 0x7be   :  { %v1637_v18 = vadd.f32 %v1636_v16, %v1218_v11  ;;  %v1638_v19 = vpop.f32.mrb[30].mxu1  ;;  %v1678_v20 = vpop.f32.mrb[22].mxu0 }
 0x7bf   :  { %v1685_v21 = vmul.f32 0.5, %v1635_v14  ;;  %v1687_v22 = vmul.f32 0.5, %v1676_v15  ;;  %v1639_v23 = vpop.f32.mrb[31].mxu1  ;;  %v2069_v24 = vpop.f32.mrb[23].mxu0 }
 0x7c0   :  { %v1686_v25 = vmul.f32 0.5, %v1637_v18 }
 0x7c1   :  { %2235 = vtanh.f32 %v1685_v21 }
 0x7c2   :  { %2237 = vtanh.f32 %v1687_v22 }
 0x7c3   :  { %2239 = vtanh.f32 %v1686_v25 }
 0x7cb   :  { %v2236_v26 = vpop.eup %2235 }
 0x7cc   :  { %v2238_v27 = vpop.eup %2237  ;;  %v1699_v28 = vadd.f32 1.0, %v2236_v26 }
 0x7cd   :  { %v2240_v29 = vpop.eup %2239  ;;  %v1701_v30 = vadd.f32 1.0, %v2238_v27 }
 0x7ce   :  { %v1706_v31 = vmul.f32 0.5, %v1699_v28  ;;  %v1700_v32 = vadd.f32 1.0, %v2240_v29 }
 0x7cf   :  { %v1708_v33 = vmul.f32 0.5, %v1701_v30 }
 0x7d0   :  { %1713 = vst [vmem:[#allocation2 + $0x20] sm:$0xff] %v1706_v31  ;;  %v1707_v34 = vmul.f32 0.5, %v1700_v32 }
 0x7d1   :  { %1715 = vst.msk [vmem:[#allocation2 + $0x30] sm:$0xff] %vm476_vm1, %v1708_v33 }
 0x7d2   :  { %1714 = vst [vmem:[#allocation2 + $0x28] sm:$0xff] %v1707_v34 }
 0x7d3   :  { %2252 = shalt.err (!%p2249_p4)
}
 0x7d4   :  { %s2253_s26 = scalar_lea.hbm %s2882_s18, 896 }
 0x7d5   :  { %p2254_p5 = scmp.ne.s32.totalorder %s2882_s18, %s2253_s26  ;;  %p2257_p6 = scmp.lt.u32.totalorder %s2253_s26, %s2882_s18 }
 0x7d7   :  { %p2259_p7 = pnand %p2257_p6, %p2254_p5 }
 0x7d9   :  { %2262 = shalt.err (!%p2259_p7)
}
 0x7da   :  { %1726 = dma.vmem_to_hbm [thread:$0]  %s1724_s17, 896, %s2882_s18, [#allocation3]  }
 0x7db   :  { %2263 = dma.done.wait [#allocation3], 896  }
 0x7dc   :  { %2264 = vsyncadd [#allocation3], 4294966400 }
 0x7dd   :  { %1734 = vsyncpa [#allocation3], 1 }

</bundles_post_ra>
